<compile_context>
chip_gen: v6e
topology: v6e:2x2x1
jax: 0.10.0
libtpu: 0.0.40
codegen_flags: <defaults>
</compile_context>

<pallas_src>
import functools

import jax
import jax.numpy as jnp
from jax.experimental import pallas as pl
from jax.experimental.pallas import tpu as pltpu


HEAD_PAD = 128  # fused head width: 7 policy cols + 1 value col + zero padding -> lane dense


def _actor_critic_kernel(
    x_ref,    # (tm, IN)       f32 (cast to bf16 in-kernel; avoids a wrapper pass over x)
    w1_ref,   # (IN, H)        bf16
    b1_ref,   # (1, H)         f32
    w2_ref,   # (H, H)         bf16
    b2_ref,   # (1, H)         f32
    wh_ref,   # (H, HEAD_PAD)  bf16  (policy | value | zeros)
    bh_ref,   # (1, HEAD_PAD)  f32
    out_ref,  # (tm, HEAD_PAD) bf16
):
    x = x_ref[...].astype(jnp.bfloat16)

    # shared layer 1: Linear + ReLU (bf16 MXU operands, f32 accumulation)
    h1 = jnp.dot(x, w1_ref[...], preferred_element_type=jnp.float32) + b1_ref[...]
    h1 = jnp.maximum(h1, 0.0)

    # shared layer 2: Linear + ReLU
    h2 = jnp.dot(h1.astype(jnp.bfloat16), w2_ref[...],
                 preferred_element_type=jnp.float32) + b2_ref[...]
    h2 = jnp.maximum(h2, 0.0)

    # fused policy+value head, lane-padded to 128 cols -> single unmasked store
    out = jnp.dot(h2.astype(jnp.bfloat16), wh_ref[...],
                  preferred_element_type=jnp.float32) + bh_ref[...]
    out_ref[...] = out.astype(out_ref.dtype)


def _pick_batch_tile(batch: int) -> int:
    """Batch tile selection.

    * B <= 16: single full-batch block (block dim == array dim, no padding required).
    * Otherwise: ~half the batch rounded up to a multiple of 16 rows (bf16 sublane
      packing), capped at 1024. Large tiles amortize the ~0.35 us/step grid overhead;
      keeping >= 2 grid steps preserves megacore sharding on v7x.
      (On v5e, sweep 256/512/1024 if the f32 intermediates ever push the kernel
       from MXU-bound to vst-bound; 1024 fits VMEM comfortably on all generations.)
    """
    if batch <= 16:
        return batch
    half = 16 * pl.cdiv(pl.cdiv(batch, 2), 16)
    return min(1024, half)


def prepare_params(params):
    """One-time packing of f32 PyTorch-style params into kernel operands.

    Hoisted out of the per-call path so the bf16 casts and fused-head assembly are not
    re-run (and re-DMA'd) on every forward call.
    """
    hidden = params["w1"].shape[1]
    out_size = params["wp"].shape[1]
    assert out_size + 1 <= HEAD_PAD, "fused head (policy + value) must fit in HEAD_PAD lanes"

    wh = jnp.zeros((hidden, HEAD_PAD), jnp.bfloat16)
    wh = wh.at[:, :out_size].set(params["wp"].astype(jnp.bfloat16))
    wh = wh.at[:, out_size:out_size + 1].set(params["wv"].astype(jnp.bfloat16))
    bh = jnp.zeros((1, HEAD_PAD), jnp.float32)
    bh = bh.at[:, :out_size].set(params["bp"].astype(jnp.float32))
    bh = bh.at[:, out_size:out_size + 1].set(params["bv"].astype(jnp.float32))

    return dict(
        w1=params["w1"].astype(jnp.bfloat16),
        b1=params["b1"].astype(jnp.float32),
        w2=params["w2"].astype(jnp.bfloat16),
        b2=params["b2"].astype(jnp.float32),
        wh=wh,
        bh=bh,
    )


@functools.partial(jax.jit, static_argnames=("out_size",))
def actor_critic_forward(x, kparams, out_size: int = 7):
    """Fused actor-critic forward pass.

    x: (B, input_size) float32
    kparams: output of prepare_params()
    returns (policy_logits (B, out_size) f32, state_values (B, 1) f32)
    """
    B, in_size = x.shape
    hidden = kparams["w1"].shape[1]

    tm = _pick_batch_tile(B)
    grid = (pl.cdiv(B, tm),)

    flops = 2 * B * (in_size * hidden + hidden * hidden + hidden * HEAD_PAD)
    bytes_accessed = (
        x.size * x.dtype.itemsize
        + (kparams["w1"].size + kparams["w2"].size + kparams["wh"].size) * 2
        + (kparams["b1"].size + kparams["b2"].size + kparams["bh"].size) * 4
        + B * HEAD_PAD * 2
    )

    # NOTE: when tm does not divide B, the last tile's out-of-range input rows hold
    # implementation-defined values. This is safe: each output row depends only on its
    # own input row, and Pallas masks out-of-range output writes.
    out = pl.pallas_call(
        _actor_critic_kernel,
        grid=grid,
        in_specs=[
            pl.BlockSpec((tm, in_size), lambda i: (i, 0)),       # x   : batch-tiled
            pl.BlockSpec((in_size, hidden), lambda i: (0, 0)),   # w1  : VMEM-resident
            pl.BlockSpec((1, hidden), lambda i: (0, 0)),         # b1
            pl.BlockSpec((hidden, hidden), lambda i: (0, 0)),    # w2
            pl.BlockSpec((1, hidden), lambda i: (0, 0)),         # b2
            pl.BlockSpec((hidden, HEAD_PAD), lambda i: (0, 0)),  # fused head weight
            pl.BlockSpec((1, HEAD_PAD), lambda i: (0, 0)),       # fused head bias
        ],
        out_specs=pl.BlockSpec((tm, HEAD_PAD), lambda i: (i, 0)),
        out_shape=jax.ShapeDtypeStruct((B, HEAD_PAD), jnp.bfloat16),
        compiler_params=pltpu.CompilerParams(
            dimension_semantics=("parallel",),
        ),
        cost_estimate=pl.CostEstimate(
            flops=flops, transcendentals=0, bytes_accessed=bytes_accessed),
    )(x, kparams["w1"], kparams["b1"], kparams["w2"], kparams["b2"],
      kparams["wh"], kparams["bh"])

    logits = out[:, :out_size].astype(jnp.float32)
    values = out[:, out_size:out_size + 1].astype(jnp.float32)
    return logits, values


def init_params(key, input_size=42, hidden_size=256, output_size=7):
    """Deterministic synthetic init (PyTorch-Linear-like uniform fan-in scaling)."""
    ks = jax.random.split(key, 8)

    def linear(kw, kb, fan_in, fan_out):
        bound = 1.0 / jnp.sqrt(jnp.float32(fan_in))
        w = jax.random.uniform(kw, (fan_in, fan_out), jnp.float32, -bound, bound)
        b = jax.random.uniform(kb, (1, fan_out), jnp.float32, -bound, bound)
        return w, b

    w1, b1 = linear(ks[0], ks[1], input_size, hidden_size)
    w2, b2 = linear(ks[2], ks[3], hidden_size, hidden_size)
    wp, bp = linear(ks[4], ks[5], hidden_size, output_size)
    wv, bv = linear(ks[6], ks[7], hidden_size, 1)
    return dict(w1=w1, b1=b1, w2=w2, b2=b2, wp=wp, bp=bp, wv=wv, bv=bv)


def reference_forward_f32(x, p):
    """Plain-JAX f32 reference matching the PyTorch module semantics exactly."""
    h = jnp.maximum(x @ p["w1"] + p["b1"], 0.0)
    h = jnp.maximum(h @ p["w2"] + p["b2"], 0.0)
    return h @ p["wp"] + p["bp"], h @ p["wv"] + p["bv"]


def reference_forward_bf16(x, p):
    """Reference with the same bf16-operand / f32-accumulation numerics as the kernel."""
    def mm(a, w):
        return jnp.dot(a.astype(jnp.bfloat16), w.astype(jnp.bfloat16),
                       preferred_element_type=jnp.float32)

    h = jnp.maximum(mm(x, p["w1"]) + p["b1"], 0.0)
    h = jnp.maximum(mm(h, p["w2"]) + p["b2"], 0.0)
    return mm(h, p["wp"]) + p["bp"], mm(h, p["wv"]) + p["bv"]


def _check(x, params, kparams, out_size):
    logits, values = actor_critic_forward(x, kparams, out_size=out_size)
    jax.block_until_ready((logits, values))

    assert logits.shape == (x.shape[0], out_size)
    assert values.shape == (x.shape[0], 1)

    # vs. a reference using the same bf16-matmul / f32-accumulate numerics
    # (kernel additionally rounds the final store to bf16 -> slightly looser tolerance)
    ref_logits_bf, ref_values_bf = reference_forward_bf16(x, params)
    assert jnp.allclose(logits, ref_logits_bf, atol=1e-2, rtol=1e-2)
    assert jnp.allclose(values, ref_values_bf, atol=1e-2, rtol=1e-2)

    # sanity check vs. the full-f32 PyTorch-equivalent reference (bounded bf16 drift)
    ref_logits, ref_values = reference_forward_f32(x, params)
    assert jnp.allclose(logits, ref_logits, atol=5e-2, rtol=5e-2)
    assert jnp.allclose(values, ref_values, atol=5e-2, rtol=5e-2)


if __name__ == "__main__":
    key = jax.random.PRNGKey(0)
    k_x1, k_x2, k_p = jax.random.split(key, 3)

    input_size, hidden_size, output_size = 42, 256, 7

    params = init_params(k_p, input_size, hidden_size, output_size)
    kparams = prepare_params(params)  # one-time bf16 cast + fused-head packing

    # small-batch latency path: single full-batch block, grid=(1,)
    x_small = jax.random.normal(k_x1, (2, input_size), jnp.float32)
    _check(x_small, params, kparams, output_size)

    # multi-tile path with a partial last tile (tm=32, grid=(2,), rows 37..63 masked)
    x_med = jax.random.normal(k_x2, (37, input_size), jnp.float32)
    _check(x_med, params, kparams, output_size)

    print("KERNEL_OK")
</pallas_src>

<mosaic_0001>
module attributes {stable_mosaic.version = 11 : i64} {
  func.func @_actor_critic_kernel(%arg0: i32, %arg1: memref<2x42xf32, #tpu.memory_space<vmem>>, %arg2: memref<42x256xbf16, #tpu.memory_space<vmem>>, %arg3: memref<1x256xf32, #tpu.memory_space<vmem>>, %arg4: memref<256x256xbf16, #tpu.memory_space<vmem>>, %arg5: memref<1x256xf32, #tpu.memory_space<vmem>>, %arg6: memref<256x128xbf16, #tpu.memory_space<vmem>>, %arg7: memref<1x128xf32, #tpu.memory_space<vmem>>, %arg8: memref<2x128xbf16, #tpu.memory_space<vmem>>) attributes {dimension_semantics = [#tpu.dimension_semantics<parallel>], iteration_bounds = array<i64: 1>, scalar_prefetch = 0 : i64, scratch_operands = 0 : i64, tpu.core_type = #tpu.core_type<tc>, window_params = [{transform_indices = @transform_0, window_bounds = array<i64: 2, 42>}, {pipeline_mode = #tpu.pipeline_mode<synchronous>, transform_indices = @transform_1, window_bounds = array<i64: 42, 256>}, {pipeline_mode = #tpu.pipeline_mode<synchronous>, transform_indices = @transform_2, window_bounds = array<i64: 1, 256>}, {pipeline_mode = #tpu.pipeline_mode<synchronous>, transform_indices = @transform_3, window_bounds = array<i64: 256, 256>}, {pipeline_mode = #tpu.pipeline_mode<synchronous>, transform_indices = @transform_4, window_bounds = array<i64: 1, 256>}, {pipeline_mode = #tpu.pipeline_mode<synchronous>, transform_indices = @transform_5, window_bounds = array<i64: 256, 128>}, {pipeline_mode = #tpu.pipeline_mode<synchronous>, transform_indices = @transform_6, window_bounds = array<i64: 1, 128>}, {transform_indices = @transform_7, window_bounds = array<i64: 2, 128>}]} {
    %c0 = arith.constant 0 : index
    %c0_0 = arith.constant 0 : index
    %0 = vector.load %arg1[%c0, %c0_0] : memref<2x42xf32, #tpu.memory_space<vmem>>, vector<2x42xf32>
    %1 = arith.truncf %0 : vector<2x42xf32> to vector<2x42xbf16>
    %c0_1 = arith.constant 0 : index
    %c0_2 = arith.constant 0 : index
    %2 = vector.load %arg2[%c0_1, %c0_2] : memref<42x256xbf16, #tpu.memory_space<vmem>>, vector<42x256xbf16>
    %cst = arith.constant dense<0.000000e+00> : vector<2x256xf32>
    %3 = tpu.matmul %1, %2, %cst {dimension_numbers = #tpu.dot_dimension_numbers<[1], [0], [0], [1], [0, 0, 1, 1], [], []>} : vector<2x42xbf16>, vector<42x256xbf16>, vector<2x256xf32> -> vector<2x256xf32>
    %c0_3 = arith.constant 0 : index
    %c0_4 = arith.constant 0 : index
    %4 = vector.load %arg3[%c0_3, %c0_4] : memref<1x256xf32, #tpu.memory_space<vmem>>, vector<1x256xf32>
    %5 = vector.broadcast %4 : vector<1x256xf32> to vector<2x256xf32>
    %6 = arith.addf %3, %5 : vector<2x256xf32>
    %cst_5 = arith.constant 0.000000e+00 : f32
    %7 = vector.broadcast %cst_5 : f32 to vector<2x256xf32>
    %8 = arith.maximumf %6, %7 : vector<2x256xf32>
    %9 = arith.truncf %8 : vector<2x256xf32> to vector<2x256xbf16>
    %c0_6 = arith.constant 0 : index
    %c0_7 = arith.constant 0 : index
    %10 = vector.load %arg4[%c0_6, %c0_7] : memref<256x256xbf16, #tpu.memory_space<vmem>>, vector<256x256xbf16>
    %cst_8 = arith.constant dense<0.000000e+00> : vector<2x256xf32>
    %11 = tpu.matmul %9, %10, %cst_8 {dimension_numbers = #tpu.dot_dimension_numbers<[1], [0], [0], [1], [0, 0, 1, 1], [], []>} : vector<2x256xbf16>, vector<256x256xbf16>, vector<2x256xf32> -> vector<2x256xf32>
    %c0_9 = arith.constant 0 : index
    %c0_10 = arith.constant 0 : index
    %12 = vector.load %arg5[%c0_9, %c0_10] : memref<1x256xf32, #tpu.memory_space<vmem>>, vector<1x256xf32>
    %13 = vector.broadcast %12 : vector<1x256xf32> to vector<2x256xf32>
    %14 = arith.addf %11, %13 : vector<2x256xf32>
    %cst_11 = arith.constant 0.000000e+00 : f32
    %15 = vector.broadcast %cst_11 : f32 to vector<2x256xf32>
    %16 = arith.maximumf %14, %15 : vector<2x256xf32>
    %17 = arith.truncf %16 : vector<2x256xf32> to vector<2x256xbf16>
    %c0_12 = arith.constant 0 : index
    %c0_13 = arith.constant 0 : index
    %18 = vector.load %arg6[%c0_12, %c0_13] : memref<256x128xbf16, #tpu.memory_space<vmem>>, vector<256x128xbf16>
    %cst_14 = arith.constant dense<0.000000e+00> : vector<2x128xf32>
    %19 = tpu.matmul %17, %18, %cst_14 {dimension_numbers = #tpu.dot_dimension_numbers<[1], [0], [0], [1], [0, 0, 1, 1], [], []>} : vector<2x256xbf16>, vector<256x128xbf16>, vector<2x128xf32> -> vector<2x128xf32>
    %c0_15 = arith.constant 0 : index
    %c0_16 = arith.constant 0 : index
    %20 = vector.load %arg7[%c0_15, %c0_16] : memref<1x128xf32, #tpu.memory_space<vmem>>, vector<1x128xf32>
    %21 = vector.broadcast %20 : vector<1x128xf32> to vector<2x128xf32>
    %22 = arith.addf %19, %21 : vector<2x128xf32>
    %23 = arith.truncf %22 : vector<2x128xf32> to vector<2x128xbf16>
    %c0_17 = arith.constant 0 : index
    %c0_18 = arith.constant 0 : index
    %24 = vector.load %arg8[%c0_17, %c0_18] : memref<2x128xbf16, #tpu.memory_space<vmem>>, vector<2x128xbf16>
    tpu.vector_store %arg8[%c0_17, %c0_18], %23 {strides = array<i32>} : memref<2x128xbf16, #tpu.memory_space<vmem>>, vector<2x128xbf16>,
    return
  }
  func.func @transform_0(%arg0: i32) -> (i32, i32) {
    %c0_i32 = arith.constant 0 : i32
    %c0_i32_0 = arith.constant 0 : i32
    return %arg0, %c0_i32 : i32, i32
  }
  func.func @transform_1(%arg0: i32) -> (i32, i32) {
    %c0_i32 = arith.constant 0 : i32
    %c0_i32_0 = arith.constant 0 : i32
    %c0_i32_1 = arith.constant 0 : i32
    return %c0_i32, %c0_i32_0 : i32, i32
  }
  func.func @transform_2(%arg0: i32) -> (i32, i32) {
    %c0_i32 = arith.constant 0 : i32
    %c0_i32_0 = arith.constant 0 : i32
    %c0_i32_1 = arith.constant 0 : i32
    return %c0_i32, %c0_i32_0 : i32, i32
  }
  func.func @transform_3(%arg0: i32) -> (i32, i32) {
    %c0_i32 = arith.constant 0 : i32
    %c0_i32_0 = arith.constant 0 : i32
    %c0_i32_1 = arith.constant 0 : i32
    return %c0_i32, %c0_i32_0 : i32, i32
  }
  func.func @transform_4(%arg0: i32) -> (i32, i32) {
    %c0_i32 = arith.constant 0 : i32
    %c0_i32_0 = arith.constant 0 : i32
    %c0_i32_1 = arith.constant 0 : i32
    return %c0_i32, %c0_i32_0 : i32, i32
  }
  func.func @transform_5(%arg0: i32) -> (i32, i32) {
    %c0_i32 = arith.constant 0 : i32
    %c0_i32_0 = arith.constant 0 : i32
    %c0_i32_1 = arith.constant 0 : i32
    return %c0_i32, %c0_i32_0 : i32, i32
  }
  func.func @transform_6(%arg0: i32) -> (i32, i32) {
    %c0_i32 = arith.constant 0 : i32
    %c0_i32_0 = arith.constant 0 : i32
    %c0_i32_1 = arith.constant 0 : i32
    return %c0_i32, %c0_i32_0 : i32, i32
  }
  func.func @transform_7(%arg0: i32) -> (i32, i32) {
    %c0_i32 = arith.constant 0 : i32
    %c0_i32_0 = arith.constant 0 : i32
    return %arg0, %c0_i32 : i32, i32
  }
}

</mosaic_0001>

<bundles_post_ra>
// kernel: actor_critic_forward.1
= control target key start
LH: loop header
LB: loop body
LE: loop exit
PB: predicated region body
PF: predicated region fallthrough
CT: control target
= control target key end

     0   :  { %12 = vsyncpa [#allocation3], 0  ;;  %s970_s0 = inlined_call_operand.hbm [shape: f32[2,42], index: 0, kind: input, shape index: {}]   ;;  %s971_s1 = inlined_call_operand.hbm [shape: bf16[42,256], index: 1, kind: input, shape index: {}]   ;;  %s972_s2 = inlined_call_operand.hbm [shape: f32[1,256], index: 2, kind: input, shape index: {}]   ;;  %s973_s3 = inlined_call_operand.hbm [shape: bf16[256,256], index: 3, kind: input, shape index: {}]   ;;  %s974_s4 = inlined_call_operand.vmem [shape: f32[1,256], index: 4, kind: input, shape index: {}]   ;;  %s975_s5 = inlined_call_operand.hbm [shape: bf16[256,128], index: 5, kind: input, shape index: {}]   ;;  %s976_s6 = inlined_call_operand.vmem [shape: f32[1,128], index: 6, kind: input, shape index: {}]   ;;  %s977_s7 = inlined_call_operand.vmem [shape: bf16[2,128], index: 7, kind: output, shape index: {}]  }
   0x1   :  { %13 = vsyncpa [#allocation5], 0 }
   0x2   :  { %14 = vsyncpa [#allocation8], 0  ;;  %s896_s24 = smov [#allocation4]  }
   0x3   :  { %s30_s25 = sshll.u32 %s896_s24, 4  ;;  %s31_s25 = int_to_ptr.vmem [resolvable:$true] %s30_s25 }
   0x4   :  { %s798_s26 = scalar_lea.vmem %s31_s25, 768  ;;  %p803_p1 = scmp.lt.s32.totalorder %s31_s25, %s31_s25 }
   0x5   :  { %p799_p0 = scmp.ne.s32.totalorder %s31_s25, %s798_s26  ;;  %p804_p2 = scmp.lt.s32.totalorder %s798_s26, %s798_s26 }
   0x7   :  { %p805_p3 = por %p804_p2, %p803_p1 }
   0x9   :  { %p806_p4 = pnand %p805_p3, %p799_p0 }
   0xb   :  { %809 = shalt.err (!%p806_p4)
}
   0xc   :  { %s897_s27 = smov 128   ;;  %s898_s28 = smov 8  }
   0xd   :  { %36 = dma.hbm_to_vmem [thread:$0]  %s971_s1, 768, %s31_s25, [#allocation5], %s897_s27, %s897_s27, %s898_s28  }
   0xe   :  { %s899_s8 = smov [#allocation7]   ;;  %s900_s10 = smov [#allocation2]  }
   0xf   :  { %s52_s9 = sshll.u32 %s899_s8, 4  ;;  %s21_s11 = sshll.u32 %s900_s10, 4  ;;  %s53_s9 = int_to_ptr.vmem [resolvable:$true] %s52_s9  ;;  %s22_s11 = int_to_ptr.vmem [resolvable:$true] %s21_s11 }
  0x10   :  { %s818_s12 = scalar_lea.vmem %s53_s9, 4096  ;;  %p823_p6 = scmp.lt.s32.totalorder %s53_s9, %s53_s9 }
  0x11   :  { %p819_p5 = scmp.ne.s32.totalorder %s53_s9, %s818_s12  ;;  %p824_p7 = scmp.lt.s32.totalorder %s818_s12, %s818_s12 }
  0x13   :  { %p825_p8 = por %p824_p7, %p823_p6 }
  0x15   :  { %p826_p9 = pnand %p825_p8, %p819_p5 }
  0x17   :  { %829 = shalt.err (!%p826_p9)
}
  0x18   :  { %58 = dma.hbm_to_vmem [thread:$0]  %s973_s3, 4096, %s53_s9, [#allocation8], %s897_s27, %s897_s27, %s898_s28  }
  0x19   :  { %s838_s15 = scalar_lea.vmem %s22_s11, 32  ;;  %p843_p11 = scmp.lt.s32.totalorder %s22_s11, %s22_s11 }
  0x1a   :  { %p839_p10 = scmp.ne.s32.totalorder %s22_s11, %s838_s15  ;;  %p844_p12 = scmp.lt.s32.totalorder %s838_s15, %s838_s15 }
  0x1c   :  { %p845_p13 = por %p844_p12, %p843_p11 }
  0x1e   :  { %p846_p0 = pnand %p845_p13, %p839_p10 }
  0x20   :  { %849 = shalt.err (!%p846_p0)
}
  0x21   :  { %24 = dma.hbm_to_vmem [thread:$0]  %s970_s0, 32, %s22_s11, [#allocation3]  }
  0x22   :  { %s901_s17 = smov [#allocation6]   ;;  %s902_s19 = smov [#allocation9]  }
  0x23   :  { %s43_s18 = sshll.u32 %s901_s17, 4  ;;  %s66_s20 = sshll.u32 %s902_s19, 4  ;;  %s44_s18 = int_to_ptr.vmem [resolvable:$true] %s43_s18  ;;  %s67_s20 = int_to_ptr.vmem [resolvable:$true] %s66_s20 }
  0x24   :  { %s858_s21 = scalar_lea.vmem %s44_s18, 32  ;;  %p863_p2 = scmp.lt.s32.totalorder %s44_s18, %s44_s18 }
  0x25   :  { %p859_p1 = scmp.ne.s32.totalorder %s44_s18, %s858_s21  ;;  %p864_p3 = scmp.lt.s32.totalorder %s858_s21, %s858_s21 }
  0x27   :  { %p865_p4 = por %p864_p3, %p863_p2 }
  0x29   :  { %p866_p5 = pnand %p865_p4, %p859_p1 }
  0x2b   :  { %869 = shalt.err (!%p866_p5)
}
  0x2c   :  { %46 = dma.hbm_to_vmem [thread:$0]  %s972_s2, 32, %s44_s18, [#allocation5]  }
  0x2d   :  { %s878_s23 = scalar_lea.vmem %s67_s20, 2048  ;;  %p883_p7 = scmp.lt.s32.totalorder %s67_s20, %s67_s20 }
  0x2e   :  { %p879_p6 = scmp.ne.s32.totalorder %s67_s20, %s878_s23  ;;  %p884_p8 = scmp.lt.s32.totalorder %s878_s23, %s878_s23 }
  0x30   :  { %p885_p9 = por %p884_p8, %p883_p7 }
  0x32   :  { %p886_p10 = pnand %p885_p9, %p879_p6 }
  0x34   :  { %889 = shalt.err (!%p886_p10)
}
  0x35   :  { %s903_s0 = smov 64   ;;  %s904_s24 = smov 4  }
  0x36   :  { %72 = dma.hbm_to_vmem [thread:$0]  %s975_s5, 2048, %s67_s20, [#allocation8], %s903_s0, %s903_s0, %s904_s24  }
  0x37   :  { %890 = dma.done.wait [#allocation3], 32  }
  0x38   :  { %891 = vsyncadd [#allocation3], 4294967264 }
  0x39   :  { %892 = dma.done.wait [#allocation5], 800  }
  0x3a   :  { %893 = vsyncadd [#allocation5], 4294966496 }
  0x3b   :  { %894 = dma.done.wait [#allocation8], 6144  }
  0x3c   :  { %895 = vsyncadd [#allocation8], 4294961152  ;;  %v905_v0 = vmov 0   ;;  %vm143_vm0 = vcmask 1044480   ;;  %v720_v3 = vld [vmem:[#allocation4 + $0x14] ss:$8 sps:$4 sm:$0xff]   ;;  %v101_v54 = vlaneseq }
  0x3d   :  { %182 = vmatprep.mubr.bf16.mxu0 %v905_v0  ;;  %v717_v1 = vld [vmem:[#allocation4 + $0x24] ss:$8 sps:$4 sm:$0x1f]   ;;  %v719_v2 = vld [vmem:[#allocation4 + $0x20] ss:$8 sps:$4 sm:$0x1f]  }
  0x3e   :  { %634 = vmatprep.subr.msk.bf16.mxu0 %vm143_vm0, %v717_v1  ;;  %v145_v4 = vsel %vm143_vm0, %v719_v2, 0  ;;  %v722_v5 = vld [vmem:[#allocation4 + $0x10] ss:$8 sps:$4 sm:$0xff]   ;;  %v723_v6 = vld [vmem:[#allocation4 + $0x4] ss:$8 sps:$4 sm:$0xff]   ;;  %vm139_vm1 = vcmask 343040  }
  0x3f   :  { %161 = vmatpush1.bf16.msra.mxu0 %v145_v4  ;;  %v726_v7 = vld [vmem:[#allocation7 + $0x74] ss:$8 sps:$4 sm:$0xff]   ;;  %v728_v8 = vld [vmem:[#allocation7 + $0x70] ss:$8 sps:$4 sm:$0xff]   ;;  %v729_v10 = vld [vmem:[#allocation7 + $0x64] ss:$8 sps:$4 sm:$0xff]  }
  0x40   :  { %162 = vmatprep.subr.bf16.mxu0 %v720_v3  ;;  %v725_v9 = vld [vmem:[#allocation4] ss:$8 sps:$4 sm:$0xff]   ;;  %v91_v11 = vld [vmem:[#allocation2] sm:$0x3]  ;;  %399 = vmatprep.subr.bf16.mxu1 %v726_v7  ;;  %v731_v12 = vld [vmem:[#allocation7 + $0x60] ss:$8 sps:$4 sm:$0xff]  }
  0x41   :  { %400 = vmatpush1.bf16.msra.mxu1 %v728_v8  ;;  %v732_v13 = vld [vmem:[#allocation7 + $0x54] ss:$8 sps:$4 sm:$0xff]   ;;  %v92_v14 = vpack.c.bf16 %v91_v11, %v91_v11  ;;  %v734_v15 = vld [vmem:[#allocation7 + $0x50] ss:$8 sps:$4 sm:$0xff]   ;;  %v735_v16 = vld [vmem:[#allocation7 + $0x44] ss:$8 sps:$4 sm:$0xff]  }
  0x42   :  { %401 = vmatprep.subr.bf16.mxu1 %v729_v10  ;;  %v737_v17 = vld [vmem:[#allocation7 + $0x40] ss:$8 sps:$4 sm:$0xff]   ;;  %v738_v18 = vld [vmem:[#allocation7 + $0x34] ss:$8 sps:$4 sm:$0xff]   ;;  %v740_v19 = vld [vmem:[#allocation7 + $0x30] ss:$8 sps:$4 sm:$0xff]  }
  0x43   :  { %163 = vmatpush1.bf16.msra.mxu0 %v722_v5  ;;  %v741_v20 = vld [vmem:[#allocation7 + $0x24] ss:$8 sps:$4 sm:$0xff]   ;;  %v743_v21 = vld [vmem:[#allocation7 + $0x20] ss:$8 sps:$4 sm:$0xff]   ;;  %v744_v22 = vld [vmem:[#allocation7 + $0x14] ss:$8 sps:$4 sm:$0xff]  }
  0x44   :  { %164 = vmatprep.subr.bf16.mxu0 %v723_v6  ;;  %v746_v23 = vld [vmem:[#allocation7 + $0x10] ss:$8 sps:$4 sm:$0xff]   ;;  %v747_v24 = vld [vmem:[#allocation7 + $0x4] ss:$8 sps:$4 sm:$0xff]   ;;  %v749_v25 = vld [vmem:[#allocation7] ss:$8 sps:$4 sm:$0xff]  }
  0x45   :  { %402 = vmatpush1.bf16.msra.mxu1 %v731_v12  ;;  %v750_v26 = vld [vmem:[#allocation7 + $0xf4] ss:$8 sps:$4 sm:$0xff]   ;;  %v752_v27 = vld [vmem:[#allocation7 + $0xf0] ss:$8 sps:$4 sm:$0xff]   ;;  %v753_v28 = vld [vmem:[#allocation7 + $0xe4] ss:$8 sps:$4 sm:$0xff]  }
  0x46   :  { %403 = vmatprep.subr.bf16.mxu1 %v732_v13  ;;  %v755_v29 = vld [vmem:[#allocation7 + $0xe0] ss:$8 sps:$4 sm:$0xff]   ;;  %v756_v30 = vld [vmem:[#allocation7 + $0xd4] ss:$8 sps:$4 sm:$0xff]   ;;  %v758_v31 = vld [vmem:[#allocation7 + $0xd0] ss:$8 sps:$4 sm:$0xff]  }
  0x47   :  { %165 = vmatpush1.bf16.msra.mxu0 %v725_v9  ;;  %v759_v32 = vld [vmem:[#allocation7 + $0xc4] ss:$8 sps:$4 sm:$0xff]   ;;  %v761_v33 = vld [vmem:[#allocation7 + $0xc0] ss:$8 sps:$4 sm:$0xff]   ;;  %v762_v34 = vld [vmem:[#allocation7 + $0xb4] ss:$8 sps:$4 sm:$0xff]  }
  0x48   :  { %v764_v35 = vld [vmem:[#allocation7 + $0xb0] ss:$8 sps:$4 sm:$0xff]   ;;  %v765_v36 = vld [vmem:[#allocation7 + $0xa4] ss:$8 sps:$4 sm:$0xff]   ;;  %v767_v37 = vld [vmem:[#allocation7 + $0xa0] ss:$8 sps:$4 sm:$0xff]  }
  0x49   :  { %404 = vmatpush1.bf16.msra.mxu1 %v734_v15  ;;  %v768_v38 = vld [vmem:[#allocation7 + $0x94] ss:$8 sps:$4 sm:$0xff]   ;;  %v770_v39 = vld [vmem:[#allocation7 + $0x90] ss:$8 sps:$4 sm:$0xff]   ;;  %v771_v40 = vld [vmem:[#allocation7 + $0x84] ss:$8 sps:$4 sm:$0xff]  }
  0x4a   :  { %635 = vmatmul.mubr.msk.bf16.vlgmr.msra.gmra.mxu0 %vm139_vm1, %v92_v14  ;;  %405 = vmatprep.subr.bf16.mxu1 %v735_v16  ;;  %v773_v41 = vld [vmem:[#allocation7 + $0x80] ss:$8 sps:$4 sm:$0xff]   ;;  %v774_v42 = vld [vmem:[#allocation9 + $0x78] sm:$0xff]   ;;  %v776_v44 = vld [vmem:[#allocation9 + $0x70] sm:$0xff]   ;;  %v102_v55 = vshrl.u32 %v101_v54, 7 }
  0x4b   :  { %v775_v43 = vld [vmem:[#allocation9 + $0x38] sm:$0xff]   ;;  %685 = vmatprep.subr.bf16.mxu0 %v774_v42  ;;  %v777_v45 = vld [vmem:[#allocation9 + $0x30] sm:$0xff]   ;;  %v778_v46 = vld [vmem:[#allocation9 + $0x68] sm:$0xff]  }
  0x4c   :  { %686 = vmatpush3.bf16.msra.mxu0 %v775_v43  ;;  %v779_v47 = vld [vmem:[#allocation9 + $0x28] sm:$0xff]   ;;  %v780_v48 = vld [vmem:[#allocation9 + $0x60] sm:$0xff]   ;;  %v782_v50 = vld [vmem:[#allocation9 + $0x58] sm:$0xff]   ;;  %v103_v56 = vsub.s32 0, %v102_v55  ;;  %v107_v58 = vsub.s32 1, %v102_v55 }
  0x4d   :  { %406 = vmatpush1.bf16.msra.mxu1 %v737_v17  ;;  %687 = vmatprep.subr.bf16.mxu0 %v776_v44  ;;  %v781_v49 = vld [vmem:[#allocation9 + $0x20] sm:$0xff]   ;;  %v783_v51 = vld [vmem:[#allocation9 + $0x18] sm:$0xff]   ;;  %v784_v52 = vld [vmem:[#allocation9 + $0x50] sm:$0xff]  }
  0x4e   :  { %407 = vmatprep.subr.bf16.mxu1 %v738_v18  ;;  %v785_v53 = vld [vmem:[#allocation9 + $0x10] sm:$0xff]   ;;  %v99_v57 = vld [vmem:[#allocation6] sm:$0x3]  ;;  %v786_v7 = vld [vmem:[#allocation9 + $0x48] sm:$0xff]  }
  0x4f   :  { %v104_v59 = vrot.slane %v99_v57, %v103_v56  ;;  %v108_v60 = vrot.slane %v99_v57, %v107_v58  ;;  %v787_v8 = vld [vmem:[#allocation9 + $0x8] sm:$0xff]   ;;  %v788_v9 = vld [vmem:[#allocation9 + $0x40] sm:$0xff]  }
  0x50   :  { %688 = vmatpush3.bf16.msra.mxu0 %v777_v45  ;;  %v789_v10 = vld [vmem:[#allocation9] sm:$0xff]   ;;  %v227_v11 = vld [vmem:[%s974_s4] sm:$0x3] }
  0x51   :  { %408 = vmatpush1.bf16.msra.mxu1 %v740_v19  ;;  %689 = vmatprep.subr.bf16.mxu0 %v778_v46  ;;  %v232_v12 = vrot.slane %v227_v11, %v103_v56  ;;  %v236_v13 = vrot.slane %v227_v11, %v107_v58 }
  0x52   :  { %409 = vmatprep.subr.bf16.mxu1 %v741_v20 }
  0x54   :  { %690 = vmatpush3.bf16.msra.mxu0 %v779_v47 }
  0x55   :  { %410 = vmatpush1.bf16.msra.mxu1 %v743_v21  ;;  %691 = vmatprep.subr.bf16.mxu0 %v780_v48 }
  0x56   :  { %411 = vmatprep.subr.bf16.mxu1 %v744_v22 }
  0x58   :  { %692 = vmatpush3.bf16.msra.mxu0 %v781_v49 }
  0x59   :  { %412 = vmatpush1.bf16.msra.mxu1 %v746_v23  ;;  %693 = vmatprep.subr.bf16.mxu0 %v782_v50 }
  0x5a   :  { %413 = vmatprep.subr.bf16.mxu1 %v747_v24 }
  0x5c   :  { %694 = vmatpush3.bf16.msra.mxu0 %v783_v51 }
  0x5d   :  { %414 = vmatpush1.bf16.msra.mxu1 %v749_v25  ;;  %695 = vmatprep.subr.bf16.mxu0 %v784_v52  ;;  %v668_v25 = vld [vmem:[%s976_s6] ss:$0 sm:$0xff] }
  0x5e   :  { %415 = vmatprep.subr.bf16.mxu1 %v750_v26 }
  0x60   :  { %696 = vmatpush3.bf16.msra.mxu0 %v785_v53 }
  0x61   :  { %416 = vmatpush2.bf16.msra.mxu1 %v752_v27  ;;  %697 = vmatprep.subr.bf16.mxu0 %v786_v7 }
  0x62   :  { %417 = vmatprep.subr.bf16.mxu1 %v753_v28 }
  0x64   :  { %698 = vmatpush3.bf16.msra.mxu0 %v787_v8 }
  0x65   :  { %418 = vmatpush2.bf16.msra.mxu1 %v755_v29  ;;  %699 = vmatprep.subr.bf16.mxu0 %v788_v9 }
  0x66   :  { %419 = vmatprep.subr.bf16.mxu1 %v756_v30 }
  0x68   :  { %700 = vmatpush3.bf16.msra.mxu0 %v789_v10 }
  0x69   :  { %420 = vmatpush2.bf16.msra.mxu1 %v758_v31 }
  0x6a   :  { %421 = vmatprep.subr.bf16.mxu1 %v759_v32 }
  0x6d   :  { %422 = vmatpush2.bf16.msra.mxu1 %v761_v33 }
  0x6e   :  { %423 = vmatprep.subr.bf16.mxu1 %v762_v34 }
  0x71   :  { %424 = vmatpush2.bf16.msra.mxu1 %v764_v35 }
  0x72   :  { %425 = vmatprep.subr.bf16.mxu1 %v765_v36 }
  0x75   :  { %426 = vmatpush2.bf16.msra.mxu1 %v767_v37 }
  0x76   :  { %427 = vmatprep.subr.bf16.mxu1 %v768_v38 }
  0x79   :  { %428 = vmatpush2.bf16.msra.mxu1 %v770_v39 }
  0x7a   :  { %429 = vmatprep.subr.bf16.mxu1 %v771_v40 }
  0x7d   :  { %430 = vmatpush2.bf16.msra.mxu1 %v773_v41 }
 0x10a   :  { %v184_v61 = vpop.f32.mrf.mxu0 }
 0x10b   :  { %v185_v62 = vadd.f32 %v184_v61, %v104_v59 }
 0x10c   :  { %v186_v63 = vpop.f32.mrf.mxu0 }
 0x10d   :  { %v187_v0 = vadd.f32 %v186_v63, %v108_v60  ;;  %v191_v1 = vmax.f32 %v185_v62, 0.0 }
 0x10e   :  { %v188_v2 = vpop.f32.mrf.mxu0 }
 0x10f   :  { %v192_v3 = vmax.f32 %v187_v0, 0.0  ;;  %v193_v6 = vpack.c.bf16 %v191_v1, %v191_v1 }
 0x110   :  { %v189_v4 = vpop.f32.mrf.mxu0 }
 0x111   :  { %v194_v5 = vpack.c.bf16 %v192_v3, %v192_v3 }
 0x113   :  { %431 = vmatprep.mubr.bf16.mxu1 %v194_v5 }
 0x114   :  { %432 = vmatmul.mubr.bf16.vlgmr.msra.gmra.mxu1 %v193_v6 }
 0x1d4   :  { %v433_v14 = vpop.f32.mrf.mxu1 }
 0x1d5   :  { %v434_v15 = vadd.f32 %v433_v14, %v232_v12 }
 0x1d6   :  { %v435_v16 = vpop.f32.mrf.mxu1 }
 0x1d7   :  { %v436_v17 = vadd.f32 %v435_v16, %v236_v13  ;;  %v440_v18 = vmax.f32 %v434_v15, 0.0 }
 0x1d8   :  { %v437_v19 = vpop.f32.mrf.mxu1 }
 0x1d9   :  { %v441_v20 = vmax.f32 %v436_v17, 0.0  ;;  %v442_v23 = vpack.c.bf16 %v440_v18, %v440_v18 }
 0x1da   :  { %v438_v21 = vpop.f32.mrf.mxu1 }
 0x1db   :  { %v443_v22 = vpack.c.bf16 %v441_v20, %v441_v20 }
 0x1dd   :  { %611 = vmatprep.mubr.bf16.mxu0 %v443_v22 }
 0x1de   :  { %612 = vmatmul.mubr.bf16.vlgmr.msra.gmra.mxu0 %v442_v23 }
 0x29e   :  { %v701_v24 = vpop.f32.mrf.mxu0 }
 0x2a0   :  { %v702_v26 = vpop.f32.mrf.mxu0 }
 0x2a1   :  { %v703_v27 = vadd.f32 %v702_v26, %v701_v24 }
 0x2a2   :  { %v704_v28 = vpop.f32.mrf.mxu0 }
 0x2a3   :  { %v614_v29 = vadd.f32 %v703_v27, %v668_v25 }
 0x2a4   :  { %v705_v30 = vpop.f32.mrf.mxu0 }
 0x2a5   :  { %v619_v31 = vpack.c.bf16 %v614_v29, %v614_v29 }
 0x2a7   :  { %620 = vst [vmem:[%s977_s7] sm:$0x1] %v619_v31 }
 0x2a8   :  { %625 = vsyncpa [#allocation3], 1 }
 0x2a9   :  { %626 = vsyncpa [#allocation5], 1 }
 0x2aa   :  { %627 = vsyncpa [#allocation8], 1 }

</bundles_post_ra>
